<compile_context>
chip_gen: v5e
topology: v5e:2x2
jax: 0.10.0
libtpu: 0.0.40
codegen_flags: <defaults>
</compile_context>

<pallas_src>
import functools

import jax
import jax.numpy as jnp
from jax.experimental import pallas as pl
from jax.experimental.pallas import tpu as pltpu


def _fast_weight_kernel(a_ref, xr_ref, xc_ref, a_out_ref, x_out_ref, *, lam, eta):
    # a_ref:  (TB, TR, Hp)   A row-tile for TB batch elements
    # xr_ref: (TB, 1,  Hp)   x as a row vector (full feature dim)
    # xc_ref: (TB, TR, 1)    x restricted to this row tile, as a column vector
    a = a_ref[...].astype(jnp.float32)
    x_row = xr_ref[...].astype(jnp.float32)
    x_col = xc_ref[...].astype(jnp.float32)

    # Hebbian write: rank-1 outer product via VPU broadcasts (no MXU).
    outer = x_col * x_row                      # (TB, TR, Hp)
    if eta != 1.0:
        outer = eta * outer
    a_scaled = a if lam == 1.0 else lam * a
    a_new = a_scaled + outer                   # (TB, TR, Hp)

    # Fast-weight read: x_new[b, i] = sum_j a_new[b, i, j] * x[b, j]
    # VPU multiply + XLU lane reduce — no transpose of the big operand.
    x_new = jnp.sum(a_new * x_row, axis=-1)    # (TB, TR)

    a_out_ref[...] = a_new.astype(a_out_ref.dtype)
    x_out_ref[...] = x_new[:, None, :].astype(x_out_ref.dtype)


def fast_weight_forward(A, x, lam=1.0, eta=1.0, mode="hebb"):
    """Pallas implementation of FastWeight.forward (mode='hebb').

    A: [B, H, H], x: [B, H].  Returns (A_, x_) with the same shapes/dtypes.
    """
    if mode != "hebb":
        # TODO(synk): 'oja' / 'sanger' update modes not implemented (module default is 'hebb').
        raise NotImplementedError("Only mode='hebb' is implemented in the Pallas kernel.")

    B, H = x.shape
    assert A.shape == (B, H, H)
    itemsize = jnp.dtype(A.dtype).itemsize

    # Pad the feature dim up to a multiple of 128 so every block is lane-dense
    # (unmasked stores, full-lane DMA rows).  Zero padding is exact for this op.
    Hp = ((H + 127) // 128) * 128
    if Hp != H:
        A_p = jnp.pad(A, ((0, 0), (0, Hp - H), (0, Hp - H)))
        x_p = jnp.pad(x, ((0, 0), (0, Hp - H)))
    else:
        A_p, x_p = A, x
    x_row = x_p.reshape(B, 1, Hp)
    x_col = x_p.reshape(B, Hp, 1)

    # Tile selection: target ~2 MiB per A block (comfortably double-buffered
    # within the 32 MiB scoped VMEM limit on every generation).
    target_bytes = 2 * 1024 * 1024
    full_block_bytes = Hp * Hp * itemsize
    if full_block_bytes <= target_bytes:
        TB = min(B, max(1, target_bytes // full_block_bytes))
        while B % TB:                      # keep the grid exact
            TB -= 1
        TR = Hp
    else:
        TB = 1
        TR = min(Hp, max(128, (target_bytes // (Hp * itemsize)) // 128 * 128))
        while Hp % TR:                     # TR=128 always divides Hp
            TR -= 128
    grid = (B // TB, Hp // TR)

    kernel = functools.partial(_fast_weight_kernel, lam=float(lam), eta=float(eta))

    cost = pl.CostEstimate(
        flops=6 * B * Hp * Hp,
        transcendentals=0,
        bytes_accessed=(2 * B * Hp * Hp + 3 * B * Hp) * itemsize,
    )

    a_out, x_out = pl.pallas_call(
        kernel,
        out_shape=(
            jax.ShapeDtypeStruct((B, Hp, Hp), A.dtype),
            jax.ShapeDtypeStruct((B, 1, Hp), x.dtype),
        ),
        grid_spec=pltpu.PrefetchScalarGridSpec(
            num_scalar_prefetch=0,
            grid=grid,
            in_specs=[
                pl.BlockSpec((TB, TR, Hp), lambda b, r: (b, r, 0)),  # A row-tile
                pl.BlockSpec((TB, 1, Hp), lambda b, r: (b, 0, 0)),   # x row
                pl.BlockSpec((TB, TR, 1), lambda b, r: (b, r, 0)),   # x column (row tile)
            ],
            out_specs=[
                pl.BlockSpec((TB, TR, Hp), lambda b, r: (b, r, 0)),  # A_new
                pl.BlockSpec((TB, 1, TR), lambda b, r: (b, 0, r)),   # x_new (lane-dense)
            ],
        ),
        input_output_aliases={0: 0},  # in-place A update when A is donated
        cost_estimate=cost,
        compiler_params=pltpu.CompilerParams(
            dimension_semantics=("parallel", "parallel"),
            vmem_limit_bytes=32 * 1024 * 1024,
        ),
    )(A_p, x_row, x_col)

    if Hp != H:
        return a_out[:, :H, :H], x_out[:, 0, :H]
    return a_out, x_out.reshape(B, H)


def _reference(A, x, lam=1.0, eta=1.0):
    outer = x[:, :, None] * x[:, None, :]
    A_new = lam * A + eta * outer
    x_new = jnp.einsum("bij,bj->bi", A_new, x)
    return A_new, x_new


if __name__ == "__main__":
    # Small shapes consistent with the module: batch=2, hidden_size=32.
    B, H = 2, 32

    key = jax.random.PRNGKey(0)
    kA, kx = jax.random.split(key)
    A = jax.random.normal(kA, (B, H, H), dtype=jnp.float32)
    x = jax.random.normal(kx, (B, H), dtype=jnp.float32)

    # Default module parameters (lam = eta = 1.0, specialized fast path).
    A_new, x_new = fast_weight_forward(A, x, lam=1.0, eta=1.0, mode="hebb")
    jax.block_until_ready((A_new, x_new))
    A_ref, x_ref = _reference(A, x, lam=1.0, eta=1.0)
    assert A_new.shape == (B, H, H) and x_new.shape == (B, H)
    assert jnp.allclose(A_new, A_ref, atol=1e-5, rtol=1e-5)
    assert jnp.allclose(x_new, x_ref, atol=1e-4, rtol=1e-4)

    # Non-trivial decay / learning rate (general scaling path).
    A_new2, x_new2 = fast_weight_forward(A, x, lam=0.9, eta=0.5, mode="hebb")
    jax.block_until_ready((A_new2, x_new2))
    A_ref2, x_ref2 = _reference(A, x, lam=0.9, eta=0.5)
    assert jnp.allclose(A_new2, A_ref2, atol=1e-5, rtol=1e-5)
    assert jnp.allclose(x_new2, x_ref2, atol=1e-4, rtol=1e-4)

    print("KERNEL_OK")
</pallas_src>

<mosaic_0001>
module attributes {stable_mosaic.version = 11 : i64} {
  func.func @_fast_weight_kernel(%arg0: i32, %arg1: i32, %arg2: memref<2x128x128xf32, #tpu.memory_space<vmem>>, %arg3: memref<2x1x128xf32, #tpu.memory_space<vmem>>, %arg4: memref<2x128x1xf32, #tpu.memory_space<vmem>>, %arg5: memref<2x128x128xf32, #tpu.memory_space<vmem>>, %arg6: memref<2x1x128xf32, #tpu.memory_space<vmem>>) attributes {dimension_semantics = [#tpu.dimension_semantics<parallel>, #tpu.dimension_semantics<parallel>], iteration_bounds = array<i64: 1, 1>, scalar_prefetch = 0 : i64, scratch_operands = 0 : i64, tpu.core_type = #tpu.core_type<tc>, window_params = [{transform_indices = @transform_0, window_bounds = array<i64: 2, 128, 128>}, {transform_indices = @transform_1, window_bounds = array<i64: 2, 1, 128>}, {transform_indices = @transform_2, window_bounds = array<i64: 2, 128, 1>}, {transform_indices = @transform_3, window_bounds = array<i64: 2, 128, 128>}, {transform_indices = @transform_4, window_bounds = array<i64: 2, 1, 128>}]} {
    %c0 = arith.constant 0 : index
    %c0_0 = arith.constant 0 : index
    %c0_1 = arith.constant 0 : index
    %0 = vector.load %arg2[%c0, %c0_0, %c0_1] : memref<2x128x128xf32, #tpu.memory_space<vmem>>, vector<2x128x128xf32>
    %c0_2 = arith.constant 0 : index
    %c0_3 = arith.constant 0 : index
    %c0_4 = arith.constant 0 : index
    %1 = vector.load %arg3[%c0_2, %c0_3, %c0_4] : memref<2x1x128xf32, #tpu.memory_space<vmem>>, vector<2x1x128xf32>
    %c0_5 = arith.constant 0 : index
    %c0_6 = arith.constant 0 : index
    %c0_7 = arith.constant 0 : index
    %2 = vector.load %arg4[%c0_5, %c0_6, %c0_7] : memref<2x128x1xf32, #tpu.memory_space<vmem>>, vector<2x128x1xf32>
    %3 = vector.broadcast %2 : vector<2x128x1xf32> to vector<2x128x128xf32>
    %4 = vector.broadcast %1 : vector<2x1x128xf32> to vector<2x128x128xf32>
    %5 = arith.mulf %3, %4 : vector<2x128x128xf32>
    %6 = arith.addf %0, %5 : vector<2x128x128xf32>
    %7 = vector.broadcast %1 : vector<2x1x128xf32> to vector<2x128x128xf32>
    %8 = arith.mulf %6, %7 : vector<2x128x128xf32>
    %cst = arith.constant dense<0.000000e+00> : vector<2x128xf32>
    %9 = vector.multi_reduction <add>, %8, %cst [2] : vector<2x128x128xf32> to vector<2x128xf32>
    %c0_8 = arith.constant 0 : index
    %c0_9 = arith.constant 0 : index
    %c0_10 = arith.constant 0 : index
    %10 = vector.load %arg5[%c0_8, %c0_9, %c0_10] : memref<2x128x128xf32, #tpu.memory_space<vmem>>, vector<2x128x128xf32>
    tpu.vector_store %arg5[%c0_8, %c0_9, %c0_10], %6 {strides = array<i32>} : memref<2x128x128xf32, #tpu.memory_space<vmem>>, vector<2x128x128xf32>,
    %11 = vector.shape_cast %9 : vector<2x128xf32> to vector<2x1x128xf32>
    %c0_11 = arith.constant 0 : index
    %c0_12 = arith.constant 0 : index
    %c0_13 = arith.constant 0 : index
    %12 = vector.load %arg6[%c0_11, %c0_12, %c0_13] : memref<2x1x128xf32, #tpu.memory_space<vmem>>, vector<2x1x128xf32>
    tpu.vector_store %arg6[%c0_11, %c0_12, %c0_13], %11 {strides = array<i32>} : memref<2x1x128xf32, #tpu.memory_space<vmem>>, vector<2x1x128xf32>,
    return
  }
  func.func @transform_0(%arg0: i32, %arg1: i32) -> (i32, i32, i32) {
    %c0_i32 = arith.constant 0 : i32
    %c0_i32_0 = arith.constant 0 : i32
    return %arg0, %arg1, %c0_i32 : i32, i32, i32
  }
  func.func @transform_1(%arg0: i32, %arg1: i32) -> (i32, i32, i32) {
    %c0_i32 = arith.constant 0 : i32
    %c0_i32_0 = arith.constant 0 : i32
    %c0_i32_1 = arith.constant 0 : i32
    return %arg0, %c0_i32, %c0_i32_0 : i32, i32, i32
  }
  func.func @transform_2(%arg0: i32, %arg1: i32) -> (i32, i32, i32) {
    %c0_i32 = arith.constant 0 : i32
    %c0_i32_0 = arith.constant 0 : i32
    return %arg0, %arg1, %c0_i32 : i32, i32, i32
  }
  func.func @transform_3(%arg0: i32, %arg1: i32) -> (i32, i32, i32) {
    %c0_i32 = arith.constant 0 : i32
    %c0_i32_0 = arith.constant 0 : i32
    return %arg0, %arg1, %c0_i32 : i32, i32, i32
  }
  func.func @transform_4(%arg0: i32, %arg1: i32) -> (i32, i32, i32) {
    %c0_i32 = arith.constant 0 : i32
    %c0_i32_0 = arith.constant 0 : i32
    return %arg0, %c0_i32, %arg1 : i32, i32, i32
  }
}

</mosaic_0001>

<bundles_post_ra>
// kernel: tpu_custom_call.1
= control target key start
LH: loop header
LB: loop body
LE: loop exit
PB: predicated region body
PF: predicated region fallthrough
CT: control target
= control target key end

     0   :  { %10 = vsyncpa [#allocation3], 0  ;;  %s1013_s0 = inlined_call_operand.hbm [shape: f32[2,128,128], index: 0, kind: input, shape index: {}, may-alias: {0,3}]   ;;  %s1014_s1 = inlined_call_operand.vmem [shape: f32[2,1,128], index: 1, kind: input, shape index: {}]   ;;  %s1015_s2 = inlined_call_operand.vmem [shape: f32[2,128,1], index: 2, kind: input, shape index: {}]   ;;  %s1016_s3 = inlined_call_operand.hbm [shape: f32[2,128,128], index: 3, kind: output, shape index: {0}, may-alias: {0,3}]   ;;  %s1017_s4 = inlined_call_operand.hbm [shape: f32[2,1,128], index: 4, kind: output, shape index: {1}]  }
   0x1   :  { %11 = vsyncpa [#allocation4], 0 }
   0x2   :  { %12 = vsyncpa [#allocation7], 0  ;;  %s17_s17 = sshll.u32 %s1013_s0, 4  ;;  %s716_s18 = smov [#allocation2]   ;;  %s18_s17 = int_to_ptr.hbm [resolvable:$true] %s17_s17 }
   0x3   :  { %s19_s19 = sshll.u32 %s716_s18, 4  ;;  %s717_s20 = smov 128   ;;  %s20_s19 = int_to_ptr.vmem [resolvable:$true] %s19_s19 }
   0x4   :  { %s718_s21 = smov 8  }
   0x5   :  { %25 = dma.hbm_to_vmem [thread:$0]  %s18_s17, 4096, %s20_s19, [#allocation3], %s717_s20, %s717_s20, %s718_s21  }
   0x6   :  { %710 = dma.done.wait [#allocation3], 4096  }
   0x7   :  { %711 = vsyncadd [#allocation3], 4294963200  ;;  %v719_v0 = vmov 0   ;;  %v72_v1 = vld [vmem:[%s1015_s2 + $0x20] sm:$0xff]  ;;  %v70_v2 = vld [vmem:[%s1015_s2 + $0x10] sm:$0xff]  ;;  %s594_s15 = sshll.u32 %s1016_s3, 4  ;;  %s595_s15 = int_to_ptr.hbm [resolvable:$true] %s594_s15 }
   0x8   :  { %635 = vset.pattern.permute.xlu2 %v719_v0  ;;  %634 = vset.pattern.permute.xlu1 %v719_v0  ;;  %v68_v3 = vld [vmem:[%s1015_s2] sm:$0xff]  ;;  %v73_v4 = vld [vmem:[%s1015_s2 + $0x28] sm:$0xff]  ;;  %v71_v5 = vld [vmem:[%s1015_s2 + $0x18] sm:$0xff]  ;;  %vm495_vm0 = vcmask 130112   ;;  %vm499_vm1 = vcmask 195712   ;;  %vm503_vm2 = vcmask 261312  }
   0x9   :  { %633 = vset.pattern.permute.xlu0 %v719_v0  ;;  %122 = vperm.xlu2 %635, %v72_v1   ;;  %v69_v6 = vld [vmem:[%s1015_s2 + $0x8] sm:$0xff]  ;;  %v76_v7 = vld [vmem:[%s1015_s2 + $0x40] sm:$0xff]  ;;  %v75_v8 = vld [vmem:[%s1015_s2 + $0x38] sm:$0xff]  ;;  %vm507_vm3 = vcmask 326912   ;;  %vm511_vm4 = vcmask 392512   ;;  %vm515_vm5 = vcmask 458112  }
   0xa   :  { %112 = vperm.xlu1 %634, %v70_v2   ;;  %102 = vperm.xlu0 %633, %v68_v3   ;;  %v74_v9 = vld [vmem:[%s1015_s2 + $0x30] sm:$0xff]  ;;  %v79_v10 = vld [vmem:[%s1015_s2 + $0x58] sm:$0xff]  ;;  %v77_v12 = vld [vmem:[%s1015_s2 + $0x48] sm:$0xff]  ;;  %vm519_vm6 = vcmask 523712   ;;  %vm523_vm7 = vcmask 589312   ;;  %vm527_vm8 = vcmask 654912  }
   0xb   :  { %v78_v11 = vld [vmem:[%s1015_s2 + $0x50] sm:$0xff]  ;;  %v81_v14 = vld [vmem:[%s1015_s2 + $0x68] sm:$0xff]  ;;  %v80_v15 = vld [vmem:[%s1015_s2 + $0x60] sm:$0xff]  ;;  %vm531_vm9 = vcmask 720512   ;;  %vm535_vm10 = vcmask 786112   ;;  %vm539_vm11 = vcmask 851712  }
   0xc   :  { %v82_v13 = vld [vmem:[%s1015_s2 + $0x70] sm:$0xff]  ;;  %v85_v16 = vld [vmem:[%s1015_s2 + $0x88] sm:$0xff]  ;;  %v84_v17 = vld [vmem:[%s1015_s2 + $0x80] sm:$0xff]  ;;  %vm543_vm12 = vcmask 917312   ;;  %vm547_vm13 = vcmask 982912   ;;  %s721_s3 = smov [#allocation6]  }
   0xd   :  { %v83_v18 = vld [vmem:[%s1015_s2 + $0x78] sm:$0xff]  ;;  %v88_v19 = vld [vmem:[%s1015_s2 + $0xa0] sm:$0xff]  ;;  %v86_v21 = vld [vmem:[%s1015_s2 + $0x90] sm:$0xff]  ;;  %s607_s17 = sshll.u32 %s1017_s4, 4  ;;  %vm551_vm14 = vcmask 1048512   ;;  %s722_s18 = smov 16   ;;  %s608_s17 = int_to_ptr.hbm [resolvable:$true] %s607_s17 }
   0xe   :  { %v87_v20 = vld [vmem:[%s1015_s2 + $0x98] sm:$0xff]  ;;  %v90_v23 = vld [vmem:[%s1015_s2 + $0xb0] sm:$0xff]  ;;  %v89_v24 = vld [vmem:[%s1015_s2 + $0xa8] sm:$0xff]  ;;  %s723_s4 = smov 1  }
   0xf   :  { %v91_v22 = vld [vmem:[%s1015_s2 + $0xb8] sm:$0xff]  ;;  %v94_v25 = vld [vmem:[%s1015_s2 + $0xd0] sm:$0xff]  ;;  %v93_v26 = vld [vmem:[%s1015_s2 + $0xc8] sm:$0xff] }
  0x10   :  { %v92_v27 = vld [vmem:[%s1015_s2 + $0xc0] sm:$0xff]  ;;  %v97_v28 = vld [vmem:[%s1015_s2 + $0xe8] sm:$0xff]  ;;  %v95_v30 = vld [vmem:[%s1015_s2 + $0xd8] sm:$0xff] }
  0x11   :  { %127 = vperm.xlu2 %635, %v73_v4   ;;  %v96_v29 = vld [vmem:[%s1015_s2 + $0xe0] sm:$0xff]  ;;  %v99_v31 = vld [vmem:[%s1015_s2 + $0xf8] sm:$0xff]  ;;  %v98_v32 = vld [vmem:[%s1015_s2 + $0xf0] sm:$0xff] }
  0x12   :  { %117 = vperm.xlu1 %634, %v71_v5   ;;  %107 = vperm.xlu0 %633, %v69_v6   ;;  %v854_v33 = vld [vmem:[%s1014_s1] ss:$0 sm:$0xff]  ;;  %v39_v39 = vld [vmem:[#allocation2 + $0x28] sm:$0xff]  ;;  %v45_v47 = vld [vmem:[#allocation2 + $0x58] sm:$0xff] }
  0x13   :  { %v38_v35 = vld [vmem:[#allocation2 + $0x20] sm:$0xff]  ;;  %v36_v49 = vld [vmem:[#allocation2 + $0x10] sm:$0xff]  ;;  %v37_v63 = vld [vmem:[#allocation2 + $0x18] sm:$0xff] }
  0x14   :  { %v42_v43 = vld [vmem:[#allocation2 + $0x40] sm:$0xff]  ;;  %v48_v61 = vld [vmem:[#allocation2 + $0x70] sm:$0xff]  ;;  %v35_v3 = vld [vmem:[#allocation2 + $0x8] sm:$0xff] }
  0x15   :  { %v34_v53 = vld [vmem:[#allocation2] sm:$0xff] }
  0x19   :  { %142 = vperm.xlu2 %635, %v76_v7  }
  0x1a   :  { %137 = vperm.xlu1 %634, %v75_v8   ;;  %132 = vperm.xlu0 %633, %v74_v9   ;;  %v883_v9 = vld [vmem:[%s1014_s1 + $0x1] ss:$0 sm:$0xff]  ;;  %s720_s1 = smov [#allocation5]  }
  0x1b   :  { %s592_s12 = sshll.u32 %s720_s1, 4  ;;  %s593_s12 = int_to_ptr.vmem [resolvable:$true] %s592_s12 }
  0x21   :  { %157 = vperm.xlu2 %635, %v79_v10  }
  0x22   :  { %152 = vperm.xlu1 %634, %v78_v11   ;;  %147 = vperm.xlu0 %633, %v77_v12   ;;  %v51_v12 = vld [vmem:[#allocation2 + $0x88] sm:$0xff] }
  0x29   :  { %172 = vperm.xlu2 %635, %v82_v13  }
  0x2a   :  { %167 = vperm.xlu1 %634, %v81_v14   ;;  %162 = vperm.xlu0 %633, %v80_v15   ;;  %v41_v14 = vld [vmem:[#allocation2 + $0x38] sm:$0xff] }
  0x31   :  { %187 = vperm.xlu2 %635, %v85_v16  }
  0x32   :  { %182 = vperm.xlu1 %634, %v84_v17   ;;  %177 = vperm.xlu0 %633, %v83_v18   ;;  %v40_v18 = vld [vmem:[#allocation2 + $0x30] sm:$0xff] }
  0x39   :  { %202 = vperm.xlu2 %635, %v88_v19  }
  0x3a   :  { %197 = vperm.xlu1 %634, %v87_v20   ;;  %192 = vperm.xlu0 %633, %v86_v21  }
  0x41   :  { %217 = vperm.xlu2 %635, %v91_v22  }
  0x42   :  { %212 = vperm.xlu1 %634, %v90_v23   ;;  %207 = vperm.xlu0 %633, %v89_v24  }
  0x49   :  { %232 = vperm.xlu2 %635, %v94_v25  }
  0x4a   :  { %227 = vperm.xlu1 %634, %v93_v26   ;;  %222 = vperm.xlu0 %633, %v92_v27   ;;  %v54_v27 = vld [vmem:[#allocation2 + $0xa0] sm:$0xff] }
  0x51   :  { %247 = vperm.xlu2 %635, %v97_v28  }
  0x52   :  { %242 = vperm.xlu1 %634, %v96_v29   ;;  %237 = vperm.xlu0 %633, %v95_v30   ;;  %v44_v29 = vld [vmem:[#allocation2 + $0x50] sm:$0xff] }
  0x5a   :  { %257 = vperm.xlu1 %634, %v99_v31   ;;  %252 = vperm.xlu0 %633, %v98_v32  }
  0x63   :  { %v123_v34 = vpop.permute.xlu2 %122 }
  0x64   :  { %v270_v36 = vmul.f32 %v854_v33, %v123_v34  ;;  %v43_v34 = vld [vmem:[#allocation2 + $0x48] sm:$0xff] }
  0x66   :  { %v857_v37 = vadd.f32 %v270_v36, %v38_v35 }
  0x68   :  { %430 = vst [vmem:[#allocation5 + $0x20] sm:$0xff] %v857_v37  ;;  %v334_v25 = vmul.f32 %v854_v33, %v857_v37 }
  0x6b   :  { %v128_v38 = vpop.permute.xlu2 %127 }
  0x6c   :  { %v271_v40 = vmul.f32 %v854_v33, %v128_v38 }
  0x6e   :  { %v303_v41 = vadd.f32 %v271_v40, %v39_v39 }
  0x70   :  { %431 = vst [vmem:[#allocation5 + $0x28] sm:$0xff] %v303_v41  ;;  %v335_v24 = vmul.f32 %v854_v33, %v303_v41 }
  0x73   :  { %v143_v42 = vpop.permute.xlu2 %142 }
  0x74   :  { %v274_v44 = vmul.f32 %v854_v33, %v143_v42 }
  0x76   :  { %v862_v45 = vadd.f32 %v274_v44, %v42_v43  ;;  %v57_v43 = vld [vmem:[#allocation2 + $0xb8] sm:$0xff] }
  0x78   :  { %434 = vst [vmem:[#allocation5 + $0x40] sm:$0xff] %v862_v45  ;;  %v338_v40 = vmul.f32 %v854_v33, %v862_v45 }
  0x7b   :  { %v158_v46 = vpop.permute.xlu2 %157 }
  0x7c   :  { %v113_v48 = vpop.permute.xlu1 %112  ;;  %v277_v50 = vmul.f32 %v854_v33, %v158_v46  ;;  %v103_v52 = vpop.permute.xlu0 %102  ;;  %v47_v46 = vld [vmem:[#allocation2 + $0x68] sm:$0xff] }
  0x7d   :  { %v268_v51 = vmul.f32 %v854_v33, %v113_v48  ;;  %v266_v54 = vmul.f32 %v854_v33, %v103_v52 }
  0x7e   :  { %v868_v55 = vadd.f32 %v277_v50, %v45_v47  ;;  %v46_v50 = vld [vmem:[#allocation2 + $0x60] sm:$0xff] }
  0x7f   :  { %v300_v56 = vadd.f32 %v268_v51, %v36_v49  ;;  %v298_v57 = vadd.f32 %v266_v54, %v34_v53 }
  0x80   :  { %437 = vst [vmem:[#allocation5 + $0x58] sm:$0xff] %v868_v55 }
  0x81   :  { %v332_v58 = vmul.f32 %v854_v33, %v300_v56  ;;  %428 = vst [vmem:[#allocation5 + $0x10] sm:$0xff] %v300_v56  ;;  %v330_v59 = vmul.f32 %v854_v33, %v298_v57  ;;  %v341_v56 = vmul.f32 %v854_v33, %v868_v55 }
  0x82   :  { %426 = vst [vmem:[#allocation5] sm:$0xff] %v298_v57 }
  0x83   :  { %362 = vadd.xlane.f32.xlu2 %v330_v59  ;;  %v173_v60 = vpop.permute.xlu2 %172  ;;  %v60_v59 = vld [vmem:[#allocation2 + $0xd0] sm:$0xff] }
  0x84   :  { %v118_v62 = vpop.permute.xlu1 %117  ;;  %366 = vadd.xlane.f32.xlu1 %v332_v58  ;;  %v280_v0 = vmul.f32 %v854_v33, %v173_v60  ;;  %v108_v2 = vpop.permute.xlu0 %107 }
  0x85   :  { %v269_v1 = vmul.f32 %v854_v33, %v118_v62  ;;  %v267_v4 = vmul.f32 %v854_v33, %v108_v2 }
  0x86   :  { %v876_v5 = vadd.f32 %v280_v0, %v48_v61  ;;  %v50_v61 = vld [vmem:[#allocation2 + $0x80] sm:$0xff] }
  0x87   :  { %v301_v6 = vadd.f32 %v269_v1, %v37_v63  ;;  %v299_v7 = vadd.f32 %v267_v4, %v35_v3  ;;  %v49_v1 = vld [vmem:[#allocation2 + $0x78] sm:$0xff] }
  0x88   :  { %440 = vst [vmem:[#allocation5 + $0x70] sm:$0xff] %v876_v5 }
  0x89   :  { %v333_v8 = vmul.f32 %v854_v33, %v301_v6  ;;  %429 = vst [vmem:[#allocation5 + $0x18] sm:$0xff] %v301_v6  ;;  %v331_v10 = vmul.f32 %v854_v33, %v299_v7 }
  0x8a   :  { %427 = vst [vmem:[#allocation5 + $0x8] sm:$0xff] %v299_v7 }
  0x8b   :  { %364 = vadd.xlane.f32.xlu0 %v331_v10  ;;  %368 = vadd.xlane.f32.xlu2 %v333_v8  ;;  %v188_v11 = vpop.permute.xlu2 %187  ;;  %v63_v10 = vld [vmem:[#allocation2 + $0xe8] sm:$0xff] }
  0x8c   :  { %v138_v13 = vpop.permute.xlu1 %137  ;;  %v283_v15 = vmul.f32 %v883_v9, %v188_v11  ;;  %v133_v17 = vpop.permute.xlu0 %132 }
  0x8d   :  { %v273_v16 = vmul.f32 %v854_v33, %v138_v13  ;;  %v272_v19 = vmul.f32 %v854_v33, %v133_v17 }
  0x8e   :  { %v889_v20 = vadd.f32 %v283_v15, %v51_v12  ;;  %v53_v12 = vld [vmem:[#allocation2 + $0x98] sm:$0xff] }
  0x8f   :  { %v305_v21 = vadd.f32 %v273_v16, %v41_v14  ;;  %v304_v22 = vadd.f32 %v272_v19, %v40_v18  ;;  %v52_v16 = vld [vmem:[#allocation2 + $0x90] sm:$0xff] }
  0x90   :  { %443 = vst [vmem:[#allocation5 + $0x88] sm:$0xff] %v889_v20  ;;  %v347_v7 = vmul.f32 %v883_v9, %v889_v20 }
  0x91   :  { %433 = vst [vmem:[#allocation5 + $0x38] sm:$0xff] %v305_v21  ;;  %v336_v23 = vmul.f32 %v854_v33, %v304_v22  ;;  %v337_v41 = vmul.f32 %v854_v33, %v305_v21 }
  0x92   :  { %432 = vst [vmem:[#allocation5 + $0x30] sm:$0xff] %v304_v22 }
  0x93   :  { %374 = vadd.xlane.f32.xlu1 %v336_v23  ;;  %372 = vadd.xlane.f32.xlu0 %v335_v24  ;;  %v203_v26 = vpop.permute.xlu2 %202 }
  0x94   :  { %v153_v28 = vpop.permute.xlu1 %152  ;;  %370 = vadd.xlane.f32.xlu2 %v334_v25  ;;  %v286_v30 = vmul.f32 %v883_v9, %v203_v26  ;;  %v148_v32 = vpop.permute.xlu0 %147  ;;  %v56_v25 = vld [vmem:[#allocation2 + $0xb0] sm:$0xff] }
  0x95   :  { %v276_v31 = vmul.f32 %v854_v33, %v153_v28  ;;  %v275_v35 = vmul.f32 %v854_v33, %v148_v32  ;;  %v55_v28 = vld [vmem:[#allocation2 + $0xa8] sm:$0xff] }
  0x96   :  { %v899_v36 = vadd.f32 %v286_v30, %v54_v27 }
  0x97   :  { %v308_v38 = vadd.f32 %v276_v31, %v44_v29  ;;  %v307_v39 = vadd.f32 %v275_v35, %v43_v34 }
  0x98   :  { %446 = vst [vmem:[#allocation5 + $0xa0] sm:$0xff] %v899_v36  ;;  %v350_v23 = vmul.f32 %v883_v9, %v899_v36 }
  0x99   :  { %436 = vst [vmem:[#allocation5 + $0x50] sm:$0xff] %v308_v38  ;;  %v339_v37 = vmul.f32 %v854_v33, %v307_v39  ;;  %v340_v57 = vmul.f32 %v854_v33, %v308_v38  ;;  %v59_v38 = vld [vmem:[#allocation2 + $0xc8] sm:$0xff] }
  0x9a   :  { %435 = vst [vmem:[#allocation5 + $0x48] sm:$0xff] %v307_v39 }
  0x9b   :  { %380 = vadd.xlane.f32.xlu1 %v339_v37  ;;  %378 = vadd.xlane.f32.xlu0 %v338_v40  ;;  %v218_v42 = vpop.permute.xlu2 %217  ;;  %v58_v40 = vld [vmem:[#allocation2 + $0xc0] sm:$0xff] }
  0x9c   :  { %v168_v44 = vpop.permute.xlu1 %167  ;;  %376 = vadd.xlane.f32.xlu2 %v337_v41  ;;  %v289_v47 = vmul.f32 %v883_v9, %v218_v42  ;;  %v163_v49 = vpop.permute.xlu0 %162 }
  0x9d   :  { %v279_v48 = vmul.f32 %v854_v33, %v168_v44  ;;  %v278_v51 = vmul.f32 %v854_v33, %v163_v49  ;;  %v62_v49 = vld [vmem:[#allocation2 + $0xe0] sm:$0xff] }
  0x9e   :  { %v909_v52 = vadd.f32 %v289_v47, %v57_v43 }
  0x9f   :  { %v911_v45 = vadd.f32 %v279_v48, %v47_v46  ;;  %v310_v53 = vadd.f32 %v278_v51, %v46_v50 }
  0xa0   :  { %449 = vst [vmem:[#allocation5 + $0xb8] sm:$0xff] %v909_v52  ;;  %v353_v35 = vmul.f32 %v883_v9, %v909_v52  ;;  %v61_v52 = vld [vmem:[#allocation2 + $0xd8] sm:$0xff] }
  0xa1   :  { %439 = vst [vmem:[#allocation5 + $0x68] sm:$0xff] %v911_v45  ;;  %v342_v54 = vmul.f32 %v854_v33, %v310_v53 }
  0xa2   :  { %438 = vst [vmem:[#allocation5 + $0x60] sm:$0xff] %v310_v53 }
  0xa3   :  { %386 = vadd.xlane.f32.xlu1 %v342_v54  ;;  %384 = vadd.xlane.f32.xlu0 %v341_v56  ;;  %v233_v58 = vpop.permute.xlu2 %232 }
  0xa4   :  { %v183_v60 = vpop.permute.xlu1 %182  ;;  %382 = vadd.xlane.f32.xlu2 %v340_v57  ;;  %v292_v62 = vmul.f32 %v883_v9, %v233_v58  ;;  %v178_v0 = vpop.permute.xlu0 %177 }
  0xa5   :  { %v282_v63 = vmul.f32 %v883_v9, %v183_v60  ;;  %v281_v2 = vmul.f32 %v854_v33, %v178_v0  ;;  %v64_v0 = vld [vmem:[#allocation2 + $0xf0] sm:$0xff] }
  0xa6   :  { %v324_v3 = vadd.f32 %v292_v62, %v60_v59  ;;  %v343_v59 = vmul.f32 %v854_v33, %v911_v45 }
  0xa7   :  { %v314_v55 = vadd.f32 %v282_v63, %v50_v61  ;;  %v922_v4 = vadd.f32 %v281_v2, %v49_v1  ;;  %v65_v61 = vld [vmem:[#allocation2 + $0xf8] sm:$0xff] }
  0xa8   :  { %452 = vst [vmem:[#allocation5 + $0xd0] sm:$0xff] %v324_v3  ;;  %v356_v47 = vmul.f32 %v883_v9, %v324_v3 }
  0xa9   :  { %v346_v6 = vmul.f32 %v883_v9, %v314_v55  ;;  %442 = vst [vmem:[#allocation5 + $0x80] sm:$0xff] %v314_v55 }
  0xaa   :  { %441 = vst [vmem:[#allocation5 + $0x78] sm:$0xff] %v922_v4 }
  0xab   :  { %396 = vadd.xlane.f32.xlu0 %v347_v7  ;;  %v248_v8 = vpop.permute.xlu2 %247  ;;  %v345_v7 = vmul.f32 %v854_v33, %v922_v4 }
  0xac   :  { %v198_v11 = vpop.permute.xlu1 %197  ;;  %394 = vadd.xlane.f32.xlu2 %v346_v6  ;;  %v295_v13 = vmul.f32 %v883_v9, %v248_v8  ;;  %v193_v15 = vpop.permute.xlu0 %192  ;;  %v344_v6 = vmul.f32 %v854_v33, %v876_v5  ;;  %v490_v8 = vlaneseq }
  0xad   :  { %v285_v14 = vmul.f32 %v883_v9, %v198_v11  ;;  %v284_v17 = vmul.f32 %v883_v9, %v193_v15 }
  0xae   :  { %v931_v18 = vadd.f32 %v295_v13, %v63_v10  ;;  %v971_v11 = vand.u32 127, %v490_v8 }
  0xaf   :  { %v317_v19 = vadd.f32 %v285_v14, %v53_v12  ;;  %v316_v20 = vadd.f32 %v284_v17, %v52_v16 }
  0xb0   :  { %455 = vst [vmem:[#allocation5 + $0xe8] sm:$0xff] %v931_v18  ;;  %v359_v55 = vmul.f32 %v883_v9, %v931_v18  ;;  %v493_v12 = vadd.s32 4294967288, %v971_v11  ;;  %v497_v13 = vadd.s32 4294967280, %v971_v11  ;;  %v501_v15 = vadd.s32 4294967272, %v971_v11 }
  0xb1   :  { %v349_v21 = vmul.f32 %v883_v9, %v317_v19  ;;  %445 = vst [vmem:[#allocation5 + $0x98] sm:$0xff] %v317_v19  ;;  %v348_v22 = vmul.f32 %v883_v9, %v316_v20 }
  0xb2   :  { %444 = vst [vmem:[#allocation5 + $0x90] sm:$0xff] %v316_v20 }
  0xb3   :  { %398 = vadd.xlane.f32.xlu1 %v348_v22  ;;  %402 = vadd.xlane.f32.xlu0 %v350_v23 }
  0xb4   :  { %v213_v24 = vpop.permute.xlu1 %212  ;;  %400 = vadd.xlane.f32.xlu2 %v349_v21  ;;  %v208_v27 = vpop.permute.xlu0 %207 }
  0xb5   :  { %v288_v26 = vmul.f32 %v883_v9, %v213_v24  ;;  %v287_v29 = vmul.f32 %v883_v9, %v208_v27 }
  0xb7   :  { %v320_v30 = vadd.f32 %v288_v26, %v56_v25  ;;  %v319_v31 = vadd.f32 %v287_v29, %v55_v28 }
  0xb9   :  { %448 = vst [vmem:[#allocation5 + $0xb0] sm:$0xff] %v320_v30  ;;  %v352_v32 = vmul.f32 %v883_v9, %v320_v30  ;;  %v351_v34 = vmul.f32 %v883_v9, %v319_v31 }
  0xba   :  { %447 = vst [vmem:[#allocation5 + $0xa8] sm:$0xff] %v319_v31 }
  0xbb   :  { %404 = vadd.xlane.f32.xlu1 %v351_v34  ;;  %408 = vadd.xlane.f32.xlu0 %v353_v35 }
  0xbc   :  { %v228_v36 = vpop.permute.xlu1 %227  ;;  %406 = vadd.xlane.f32.xlu2 %v352_v32  ;;  %v223_v37 = vpop.permute.xlu0 %222 }
  0xbd   :  { %v291_v39 = vmul.f32 %v883_v9, %v228_v36  ;;  %v290_v41 = vmul.f32 %v883_v9, %v223_v37 }
  0xbf   :  { %v323_v42 = vadd.f32 %v291_v39, %v59_v38  ;;  %v322_v43 = vadd.f32 %v290_v41, %v58_v40 }
  0xc1   :  { %451 = vst [vmem:[#allocation5 + $0xc8] sm:$0xff] %v323_v42  ;;  %v355_v44 = vmul.f32 %v883_v9, %v323_v42  ;;  %v354_v46 = vmul.f32 %v883_v9, %v322_v43 }
  0xc2   :  { %450 = vst [vmem:[#allocation5 + $0xc0] sm:$0xff] %v322_v43  ;;  %v505_v43 = vadd.s32 4294967264, %v971_v11 }
  0xc3   :  { %410 = vadd.xlane.f32.xlu1 %v354_v46  ;;  %414 = vadd.xlane.f32.xlu0 %v356_v47  ;;  %v509_v47 = vadd.s32 4294967256, %v971_v11 }
  0xc4   :  { %v243_v48 = vpop.permute.xlu1 %242  ;;  %412 = vadd.xlane.f32.xlu2 %v355_v44  ;;  %v238_v51 = vpop.permute.xlu0 %237 }
  0xc5   :  { %v294_v50 = vmul.f32 %v883_v9, %v243_v48  ;;  %v293_v53 = vmul.f32 %v883_v9, %v238_v51 }
  0xc7   :  { %v326_v54 = vadd.f32 %v294_v50, %v62_v49  ;;  %v325_v56 = vadd.f32 %v293_v53, %v61_v52 }
  0xc9   :  { %454 = vst [vmem:[#allocation5 + $0xe0] sm:$0xff] %v326_v54  ;;  %v358_v57 = vmul.f32 %v883_v9, %v326_v54  ;;  %v357_v58 = vmul.f32 %v883_v9, %v325_v56 }
  0xca   :  { %453 = vst [vmem:[#allocation5 + $0xd8] sm:$0xff] %v325_v56  ;;  %v513_v56 = vadd.s32 4294967248, %v971_v11 }
  0xcb   :  { %416 = vadd.xlane.f32.xlu1 %v357_v58  ;;  %388 = vadd.xlane.f32.xlu0 %v343_v59  ;;  %v517_v58 = vadd.s32 4294967240, %v971_v11 }
  0xcc   :  { %v258_v60 = vpop.permute.xlu1 %257  ;;  %418 = vadd.xlane.f32.xlu2 %v358_v57  ;;  %v253_v63 = vpop.permute.xlu0 %252 }
  0xcd   :  { %v297_v62 = vmul.f32 %v883_v9, %v258_v60  ;;  %v296_v1 = vmul.f32 %v883_v9, %v253_v63  ;;  %v521_v63 = vadd.s32 4294967232, %v971_v11 }
  0xcf   :  { %v329_v2 = vadd.f32 %v297_v62, %v65_v61  ;;  %v328_v3 = vadd.f32 %v296_v1, %v64_v0 }
  0xd1   :  { %457 = vst [vmem:[#allocation5 + $0xf8] sm:$0xff] %v329_v2  ;;  %v360_v45 = vmul.f32 %v883_v9, %v328_v3  ;;  %v361_v5 = vmul.f32 %v883_v9, %v329_v2 }
  0xd2   :  { %456 = vst [vmem:[#allocation5 + $0xf0] sm:$0xff] %v328_v3 }
  0xd3   :  { %420 = vadd.xlane.f32.xlu1 %v359_v55  ;;  %422 = vadd.xlane.f32.xlu0 %v360_v45  ;;  %600 = dma.vmem_to_hbm [thread:$0]  %s593_s12, 4096, %s595_s15, [#allocation4], %s717_s20, %s717_s20, %s718_s21   ;;  %v525_v45 = vadd.s32 4294967224, %v971_v11 }
  0xd4   :  { %390 = vadd.xlane.f32.xlu2 %v344_v6  ;;  %s605_s20 = sshll.u32 %s721_s3, 4  ;;  %s606_s20 = int_to_ptr.vmem [resolvable:$true] %s605_s20 }
  0xdb   :  { %392 = vadd.xlane.f32.xlu1 %v345_v7 }
  0xdc   :  { %424 = vadd.xlane.f32.xlu2 %v361_v5 }
  0xf6   :  { %v363_v10 = vpop.xlane.xlu2 %362 }
  0xf7   :  { %v367_v14 = vpop.xlane.xlu1 %366  ;;  %v492_v33 = vperm.slane %v363_v10, %v971_v11 }
  0xf8   :  { %v498_v9 = vperm.slane %v367_v14, %v497_v13 }
  0xfe   :  { %v365_v16 = vpop.xlane.xlu0 %364  ;;  %v369_v17 = vpop.xlane.xlu2 %368 }
  0xff   :  { %v494_v4 = vperm.slane %v365_v16, %v493_v12  ;;  %v502_v19 = vperm.slane %v369_v17, %v501_v15 }
 0x101   :  { %v496_v18 = vsel %vm495_vm0, %v494_v4, %v492_v33  ;;  %v533_v33 = vadd.s32 4294967208, %v971_v11 }
 0x102   :  { %v500_v20 = vsel %vm499_vm1, %v498_v9, %v496_v18 }
 0x103   :  { %v504_v21 = vsel %vm503_vm2, %v502_v19, %v500_v20  ;;  %v537_v20 = vadd.s32 4294967200, %v971_v11 }
 0x106   :  { %v373_v22 = vpop.xlane.xlu0 %372  ;;  %v375_v24 = vpop.xlane.xlu1 %374 }
 0x107   :  { %v371_v23 = vpop.xlane.xlu2 %370  ;;  %v510_v57 = vperm.slane %v373_v22, %v509_v47  ;;  %v514_v3 = vperm.slane %v375_v24, %v513_v56 }
 0x108   :  { %v506_v49 = vperm.slane %v371_v23, %v505_v43 }
 0x10a   :  { %v508_v60 = vsel %vm507_vm3, %v506_v49, %v504_v21 }
 0x10b   :  { %v512_v1 = vsel %vm511_vm4, %v510_v57, %v508_v60 }
 0x10c   :  { %v516_v10 = vsel %vm515_vm5, %v514_v3, %v512_v1 }
 0x10e   :  { %v379_v25 = vpop.xlane.xlu0 %378  ;;  %v980_v27 = vpop.xlane.xlu1 %380 }
 0x10f   :  { %v377_v26 = vpop.xlane.xlu2 %376  ;;  %v522_v8 = vperm.slane %v379_v25, %v521_v63  ;;  %v526_v19 = vperm.slane %v980_v27, %v525_v45 }
 0x110   :  { %v518_v2 = vperm.slane %v377_v26, %v517_v58 }
 0x116   :  { %v982_v28 = vpop.xlane.xlu0 %384  ;;  %v986_v30 = vpop.xlane.xlu1 %386 }
 0x117   :  { %v984_v29 = vpop.xlane.xlu2 %382  ;;  %v534_v24 = vperm.slane %v982_v28, %v533_v33  ;;  %v538_v28 = vperm.slane %v986_v30, %v537_v20 }
 0x11e   :  { %v397_v31 = vpop.xlane.xlu0 %396 }
 0x11f   :  { %v395_v32 = vpop.xlane.xlu2 %394  ;;  %v554_v40 = vperm.slane %v397_v31, %v493_v12  ;;  %v529_v12 = vadd.s32 4294967216, %v971_v11  ;;  %v541_v31 = vadd.s32 4294967192, %v971_v11 }
 0x120   :  { %v553_v41 = vperm.slane %v395_v32, %v971_v11 }
 0x121   :  { %v530_v18 = vperm.slane %v984_v29, %v529_v12 }
 0x122   :  { %v555_v44 = vsel %vm495_vm0, %v554_v40, %v553_v41  ;;  %v549_v41 = vadd.s32 4294967176, %v971_v11 }
 0x126   :  { %v399_v34 = vpop.xlane.xlu1 %398  ;;  %v403_v35 = vpop.xlane.xlu0 %402 }
 0x127   :  { %v401_v36 = vpop.xlane.xlu2 %400  ;;  %v556_v42 = vperm.slane %v399_v34, %v497_v13  ;;  %v560_v59 = vperm.slane %v403_v35, %v505_v43  ;;  %v545_v35 = vadd.s32 4294967184, %v971_v11 }
 0x128   :  { %v558_v46 = vperm.slane %v401_v36, %v501_v15  ;;  %v520_v15 = vsel %vm519_vm6, %v518_v2, %v516_v10 }
 0x129   :  { %v557_v48 = vsel %vm499_vm1, %v556_v42, %v555_v44  ;;  %v524_v9 = vsel %vm523_vm7, %v522_v8, %v520_v15 }
 0x12a   :  { %v559_v53 = vsel %vm503_vm2, %v558_v46, %v557_v48  ;;  %v528_v25 = vsel %vm527_vm8, %v526_v19, %v524_v9 }
 0x12b   :  { %v561_v61 = vsel %vm507_vm3, %v560_v59, %v559_v53  ;;  %v532_v34 = vsel %vm531_vm9, %v530_v18, %v528_v25 }
 0x12e   :  { %v405_v38 = vpop.xlane.xlu1 %404  ;;  %v409_v39 = vpop.xlane.xlu0 %408 }
 0x12f   :  { %v407_v37 = vpop.xlane.xlu2 %406  ;;  %v562_v54 = vperm.slane %v405_v38, %v509_v47  ;;  %v566_v13 = vperm.slane %v409_v39, %v517_v58 }
 0x130   :  { %v564_v62 = vperm.slane %v407_v37, %v513_v56  ;;  %v536_v37 = vsel %vm535_vm10, %v534_v24, %v532_v34 }
 0x131   :  { %v563_v0 = vsel %vm511_vm4, %v562_v54, %v561_v61  ;;  %v540_v46 = vsel %vm539_vm11, %v538_v28, %v536_v37 }
 0x132   :  { %v565_v6 = vsel %vm515_vm5, %v564_v62, %v563_v0 }
 0x133   :  { %v567_v16 = vsel %vm519_vm6, %v566_v13, %v565_v6 }
 0x136   :  { %v411_v50 = vpop.xlane.xlu1 %410  ;;  %v415_v51 = vpop.xlane.xlu0 %414 }
 0x137   :  { %v413_v52 = vpop.xlane.xlu2 %412  ;;  %v568_v7 = vperm.slane %v411_v50, %v521_v63  ;;  %v572_v26 = vperm.slane %v415_v51, %v529_v12 }
 0x138   :  { %v570_v17 = vperm.slane %v413_v52, %v525_v45 }
 0x139   :  { %v569_v4 = vsel %vm523_vm7, %v568_v7, %v567_v16 }
 0x13a   :  { %v571_v21 = vsel %vm527_vm8, %v570_v17, %v569_v4 }
 0x13b   :  { %v573_v29 = vsel %vm531_vm9, %v572_v26, %v571_v21 }
 0x13e   :  { %v417_v55 = vpop.xlane.xlu1 %416  ;;  %v389_v14 = vpop.xlane.xlu0 %388 }
 0x13f   :  { %v419_v5 = vpop.xlane.xlu2 %418  ;;  %v574_v22 = vperm.slane %v417_v55, %v533_v33  ;;  %v542_v40 = vperm.slane %v389_v14, %v541_v31 }
 0x140   :  { %v576_v36 = vperm.slane %v419_v5, %v537_v20 }
 0x141   :  { %v575_v27 = vsel %vm535_vm10, %v574_v22, %v573_v29  ;;  %v544_v49 = vsel %vm543_vm12, %v542_v40, %v540_v46 }
 0x142   :  { %v577_v43 = vsel %vm539_vm11, %v576_v36, %v575_v27 }
 0x146   :  { %v421_v23 = vpop.xlane.xlu1 %420  ;;  %v423_v39 = vpop.xlane.xlu0 %422 }
 0x147   :  { %v391_v32 = vpop.xlane.xlu2 %390  ;;  %v578_v38 = vperm.slane %v421_v23, %v541_v31  ;;  %v580_v44 = vperm.slane %v423_v39, %v545_v35 }
 0x148   :  { %v546_v42 = vperm.slane %v391_v32, %v545_v35 }
 0x149   :  { %v579_v47 = vsel %vm543_vm12, %v578_v38, %v577_v43 }
 0x14a   :  { %v548_v30 = vsel %vm547_vm13, %v546_v42, %v544_v49  ;;  %v581_v52 = vsel %vm547_vm13, %v580_v44, %v579_v47 }
 0x14e   :  { %v393_v48 = vpop.xlane.xlu1 %392 }
 0x14f   :  { %v550_v50 = vperm.slane %v393_v48, %v549_v41  ;;  %v425_v11 = vpop.xlane.xlu2 %424 }
 0x150   :  { %v582_v51 = vperm.slane %v425_v11, %v549_v41 }
 0x151   :  { %v552_v53 = vsel %vm551_vm14, %v550_v50, %v548_v30 }
 0x152   :  { %586 = vst [vmem:[#allocation6] sm:$0x1] %v552_v53  ;;  %v583_v54 = vsel %vm551_vm14, %v582_v51, %v581_v52 }
 0x153   :  { %587 = vst [vmem:[#allocation6 + $0x1] sm:$0x1] %v583_v54 }
 0x154   :  { %613 = dma.vmem_to_hbm [thread:$0]  %s606_s20, 32, %s608_s17, [#allocation7], %s722_s18, %s722_s18, %s723_s4  }
 0x155   :  { %712 = dma.done.wait [#allocation4], 4096  }
 0x156   :  { %713 = vsyncadd [#allocation4], 4294963200 }
 0x157   :  { %714 = dma.done.wait [#allocation7], 32  }
 0x158   :  { %715 = vsyncadd [#allocation7], 4294967264 }
 0x159   :  { %622 = vsyncpa [#allocation3], 1 }
 0x15a   :  { %623 = vsyncpa [#allocation4], 1 }
 0x15b   :  { %624 = vsyncpa [#allocation7], 1 }

</bundles_post_ra>
